<compile_context>
chip_gen: v7x
topology: tpu7x:2x2x1
jax: 0.10.0
libtpu: 0.0.40
codegen_flags: <defaults>
</compile_context>

<pallas_src>
import math
import functools

import jax
import jax.numpy as jnp
from jax.experimental import pallas as pl
from jax.experimental.pallas import tpu as pltpu


def _qd_partial_kernel(packed_ref, acc_ref, *, soften):
    # packed_ref block: (3, br, 128)  -> rows of 128 samples; row 0/1/2 = y_U/y_L/y_T
    # acc_ref    block: (1, 4, 8, 128) resident accumulator of per-lane partial sums
    yu = packed_ref[0]  # (br, 128)
    yl = packed_ref[1]
    yt = packed_ref[2]

    width = yu - yl
    gamma_soft = jax.nn.sigmoid((yu - yt) * soften) * jax.nn.sigmoid((yt - yl) * soften)
    # max(0, sign(a)) * max(0, sign(b)) == (a > 0) & (b > 0)
    gamma_hard = jnp.logical_and(yu > yt, yt > yl).astype(jnp.float32)
    absw_hard = jnp.abs(width) * gamma_hard

    br = width.shape[0]

    def fold(x):
        # (br, 128) -> (8, 128): sum whole vregs together (pure VPU adds, no XLU).
        return jnp.sum(x.reshape(br // 8, 8, 128), axis=0)

    partial = jnp.stack(
        [fold(width), fold(gamma_soft), fold(gamma_hard), fold(absw_hard)],
        axis=0,
    )[None]  # (1, 4, 8, 128)

    @pl.when(pl.program_id(1) == 0)
    def _init():
        acc_ref[...] = partial

    @pl.when(pl.program_id(1) > 0)
    def _accum():
        acc_ref[...] += partial


def qd_soft_loss(y_pred, y_true, *, alpha=0.1, lambda_in=10.0, soften=100.0,
                 block_rows=512):
    """Pallas-backed equivalent of Loss.forward with loss_type='qd_soft'."""
    y_pred = jnp.asarray(y_pred, jnp.float32)
    y_true = jnp.asarray(y_true, jnp.float32)
    n = y_pred.shape[0]

    # --- static tiling plan -------------------------------------------------
    block_rows = max(8, (int(block_rows) // 8) * 8)
    rows = -(-n // 128)                                  # lanes of 128 samples
    br = max(8, min(block_rows, -(-rows // 8) * 8))      # rows per block (mult of 8)
    num_blocks = -(-rows // br)
    n_par = 2 if num_blocks >= 2 else 1                  # megacore split (v7x); 1 otherwise
    inner = -(-num_blocks // n_par)                      # blocks per parallel chunk
    rows_pad = n_par * inner * br
    npad = rows_pad * 128

    # --- pack y_U / y_L / y_T into one lane-dense buffer --------------------
    flat = jnp.zeros((3, npad), jnp.float32)
    flat = flat.at[0, :n].set(y_pred[:, 0])
    flat = flat.at[1, :n].set(y_pred[:, 1])
    flat = flat.at[2, :n].set(y_true[:, 0])
    packed = flat.reshape(3, rows_pad, 128)

    kernel = functools.partial(_qd_partial_kernel, soften=float(soften))

    partials = pl.pallas_call(
        kernel,
        out_shape=jax.ShapeDtypeStruct((n_par, 4, 8, 128), jnp.float32),
        grid=(n_par, inner),
        in_specs=[
            pl.BlockSpec((3, br, 128), lambda p, i: (0, p * inner + i, 0)),
        ],
        out_specs=pl.BlockSpec((1, 4, 8, 128), lambda p, i: (p, 0, 0, 0)),
        compiler_params=pltpu.CompilerParams(
            dimension_semantics=("parallel", "arbitrary"),
        ),
        cost_estimate=pl.CostEstimate(
            flops=20 * npad,
            transcendentals=2 * npad,
            bytes_accessed=12 * npad + n_par * 4 * 8 * 128 * 4,
        ),
    )(packed)

    # --- tiny scalar combine (JAX glue) --------------------------------------
    sums = jnp.sum(partials, axis=(0, 2, 3))             # (4,)
    n_f = jnp.float32(n)
    pad_count = jnp.float32(npad - n)

    mpiw = sums[0] / n_f
    # Zero padding gives sigmoid(0)^2 = 0.25 per padded lane; subtract it once here.
    picp_soft = (sums[1] - 0.25 * pad_count) / n_f
    picp_hard = sums[2] / n_f
    qd_lhs_hard = (sums[3] / n_f) / (picp_hard + 0.001)
    qd_rhs_soft = (
        lambda_in
        * math.sqrt(n)
        * jnp.square(jnp.maximum(jnp.float32(0.0), 1.0 - alpha - picp_soft))
    )
    loss = qd_lhs_hard + qd_rhs_soft  # qd_loss_soft = qd_lhs_hard + qd_rhs_soft
    return loss, picp_hard, mpiw


def _reference(y_pred, y_true, *, alpha=0.1, lambda_in=10.0, soften=100.0):
    # Pure-JAX reference mirroring the PyTorch forward (for sanity check).
    y_u = y_pred[:, 0]
    y_l = y_pred[:, 1]
    y_t = y_true[:, 0]
    n = y_t.shape[0]
    mpiw = jnp.mean(y_u - y_l)
    gamma = jax.nn.sigmoid((y_u - y_t) * soften) * jax.nn.sigmoid((y_t - y_l) * soften)
    gamma_hard = jnp.maximum(0.0, jnp.sign(y_u - y_t)) * jnp.maximum(0.0, jnp.sign(y_t - y_l))
    qd_lhs_hard = jnp.mean(jnp.abs(y_u - y_l) * gamma_hard) / (jnp.mean(gamma_hard) + 0.001)
    picp_soft = jnp.mean(gamma)
    picp_hard = jnp.mean(gamma_hard)
    qd_rhs_soft = lambda_in * math.sqrt(n) * jnp.maximum(0.0, 1.0 - alpha - picp_soft) ** 2
    return qd_lhs_hard + qd_rhs_soft, picp_hard, mpiw


if __name__ == "__main__":
    key = jax.random.PRNGKey(0)

    def make_case(k, n):
        k1, k2 = jax.random.split(k)
        y_true = jax.random.normal(k1, (n, 1), jnp.float32)
        noise = jax.random.uniform(k2, (n, 2), jnp.float32, minval=0.1, maxval=1.0)
        # Shift so some intervals miss / invert (exercise gamma_hard == 0 and abs()).
        y_upper = y_true[:, 0] + noise[:, 0] - 0.2
        y_lower = y_true[:, 0] - noise[:, 1] + 0.2
        return jnp.stack([y_upper, y_lower], axis=1), y_true

    # (N, block_rows): single-block, padded single-block, multi-block + megacore path.
    cases = [(8, 512), (300, 512), (4196, 8)]
    ok = True
    for n, brows in cases:
        key, sub = jax.random.split(key)
        y_pred, y_true = make_case(sub, n)
        loss, picp, mpiw = qd_soft_loss(y_pred, y_true, block_rows=brows)
        jax.block_until_ready((loss, picp, mpiw))
        ref_loss, ref_picp, ref_mpiw = _reference(y_pred, y_true)
        ok &= bool(jnp.allclose(loss, ref_loss, rtol=1e-5, atol=1e-5))
        ok &= bool(jnp.allclose(picp, ref_picp, rtol=1e-5, atol=1e-5))
        ok &= bool(jnp.allclose(mpiw, ref_mpiw, rtol=1e-5, atol=1e-5))

    assert ok, "Pallas qd_soft loss does not match the pure-JAX reference"
    print("KERNEL_OK")
</pallas_src>

<mosaic_0001>
module attributes {stable_mosaic.version = 11 : i64} {
  func.func @_qd_partial_kernel(%arg0: i32, %arg1: i32, %arg2: memref<3x8x128xf32, #tpu.memory_space<vmem>>, %arg3: memref<1x4x8x128xf32, #tpu.memory_space<vmem>>) attributes {dimension_semantics = [#tpu.dimension_semantics<parallel>, #tpu.dimension_semantics<arbitrary>], iteration_bounds = array<i64: 1, 1>, scalar_prefetch = 0 : i64, scratch_operands = 0 : i64, tpu.core_type = #tpu.core_type<tc>, window_params = [{transform_indices = @transform_0, window_bounds = array<i64: 3, 8, 128>}, {transform_indices = @transform_1, window_bounds = array<i64: 1, 4, 8, 128>}]} {
    %c0 = arith.constant 0 : index
    %c0_0 = arith.constant 0 : index
    %c0_1 = arith.constant 0 : index
    %0 = vector.load %arg2[%c0, %c0_0, %c0_1] : memref<3x8x128xf32, #tpu.memory_space<vmem>>, vector<1x8x128xf32>
    %1 = vector.shape_cast %0 : vector<1x8x128xf32> to vector<8x128xf32>
    %c1 = arith.constant 1 : index
    %c0_2 = arith.constant 0 : index
    %c0_3 = arith.constant 0 : index
    %2 = vector.load %arg2[%c1, %c0_2, %c0_3] : memref<3x8x128xf32, #tpu.memory_space<vmem>>, vector<1x8x128xf32>
    %3 = vector.shape_cast %2 : vector<1x8x128xf32> to vector<8x128xf32>
    %c2 = arith.constant 2 : index
    %c0_4 = arith.constant 0 : index
    %c0_5 = arith.constant 0 : index
    %4 = vector.load %arg2[%c2, %c0_4, %c0_5] : memref<3x8x128xf32, #tpu.memory_space<vmem>>, vector<1x8x128xf32>
    %5 = vector.shape_cast %4 : vector<1x8x128xf32> to vector<8x128xf32>
    %6 = arith.subf %1, %3 : vector<8x128xf32>
    %7 = arith.subf %1, %5 : vector<8x128xf32>
    %cst = arith.constant 1.000000e+02 : f32
    %8 = vector.broadcast %cst : f32 to vector<8x128xf32>
    %9 = arith.mulf %7, %8 : vector<8x128xf32>
    %10 = arith.negf %9 : vector<8x128xf32>
    %11 = math.exp %10 : vector<8x128xf32>
    %cst_6 = arith.constant 1.000000e+00 : f32
    %12 = vector.broadcast %cst_6 : f32 to vector<8x128xf32>
    %13 = arith.addf %12, %11 : vector<8x128xf32>
    %14 = arith.divf %12, %13 : vector<8x128xf32>
    %15 = arith.subf %5, %3 : vector<8x128xf32>
    %cst_7 = arith.constant 1.000000e+02 : f32
    %16 = vector.broadcast %cst_7 : f32 to vector<8x128xf32>
    %17 = arith.mulf %15, %16 : vector<8x128xf32>
    %18 = arith.negf %17 : vector<8x128xf32>
    %19 = math.exp %18 : vector<8x128xf32>
    %cst_8 = arith.constant 1.000000e+00 : f32
    %20 = vector.broadcast %cst_8 : f32 to vector<8x128xf32>
    %21 = arith.addf %20, %19 : vector<8x128xf32>
    %22 = arith.divf %20, %21 : vector<8x128xf32>
    %23 = arith.mulf %14, %22 : vector<8x128xf32>
    %24 = arith.cmpf ogt, %1, %5 : vector<8x128xf32>
    %25 = arith.cmpf ogt, %5, %3 : vector<8x128xf32>
    %26 = arith.andi %24, %25 : vector<8x128xi1>
    %27 = arith.extui %26 : vector<8x128xi1> to vector<8x128xi32>
    %28 = arith.sitofp %27 : vector<8x128xi32> to vector<8x128xf32>
    %29 = math.absf %6 : vector<8x128xf32>
    %30 = arith.mulf %29, %28 : vector<8x128xf32>
    %31 = vector.shape_cast %6 : vector<8x128xf32> to vector<1x8x128xf32>
    %cst_9 = arith.constant dense<0.000000e+00> : vector<8x128xf32>
    %32 = vector.multi_reduction <add>, %31, %cst_9 [0] : vector<1x8x128xf32> to vector<8x128xf32>
    %33 = vector.shape_cast %23 : vector<8x128xf32> to vector<1x8x128xf32>
    %cst_10 = arith.constant dense<0.000000e+00> : vector<8x128xf32>
    %34 = vector.multi_reduction <add>, %33, %cst_10 [0] : vector<1x8x128xf32> to vector<8x128xf32>
    %35 = vector.shape_cast %28 : vector<8x128xf32> to vector<1x8x128xf32>
    %cst_11 = arith.constant dense<0.000000e+00> : vector<8x128xf32>
    %36 = vector.multi_reduction <add>, %35, %cst_11 [0] : vector<1x8x128xf32> to vector<8x128xf32>
    %37 = vector.shape_cast %30 : vector<8x128xf32> to vector<1x8x128xf32>
    %cst_12 = arith.constant dense<0.000000e+00> : vector<8x128xf32>
    %38 = vector.multi_reduction <add>, %37, %cst_12 [0] : vector<1x8x128xf32> to vector<8x128xf32>
    %39 = vector.shape_cast %32 : vector<8x128xf32> to vector<1x8x128xf32>
    %40 = vector.shape_cast %34 : vector<8x128xf32> to vector<1x8x128xf32>
    %41 = vector.shape_cast %36 : vector<8x128xf32> to vector<1x8x128xf32>
    %42 = vector.shape_cast %38 : vector<8x128xf32> to vector<1x8x128xf32>
    %43 = tpu.concatenate %39, %40, %41, %42 in 0 : vector<1x8x128xf32>, vector<1x8x128xf32>, vector<1x8x128xf32>, vector<1x8x128xf32> -> vector<4x8x128xf32>
    %44 = vector.shape_cast %43 : vector<4x8x128xf32> to vector<1x4x8x128xf32>
    %c0_i32 = arith.constant 0 : i32
    %45 = arith.cmpi eq, %arg1, %c0_i32 : i32
    %46 = arith.extui %45 : i1 to i32
    %c0_i32_13 = arith.constant 0 : i32
    %47 = arith.cmpi ne, %46, %c0_i32_13 : i32
    scf.if %47 {
      %c0_16 = arith.constant 0 : index
      %c0_17 = arith.constant 0 : index
      %c0_18 = arith.constant 0 : index
      %c0_19 = arith.constant 0 : index
      %51 = vector.load %arg3[%c0_16, %c0_17, %c0_18, %c0_19] : memref<1x4x8x128xf32, #tpu.memory_space<vmem>>, vector<1x4x8x128xf32>
      tpu.vector_store %arg3[%c0_16, %c0_17, %c0_18, %c0_19], %44 {strides = array<i32>} : memref<1x4x8x128xf32, #tpu.memory_space<vmem>>, vector<1x4x8x128xf32>,
    } else {
    }
    %c0_i32_14 = arith.constant 0 : i32
    %48 = arith.cmpi sgt, %arg1, %c0_i32_14 : i32
    %49 = arith.extui %48 : i1 to i32
    %c0_i32_15 = arith.constant 0 : i32
    %50 = arith.cmpi ne, %49, %c0_i32_15 : i32
    scf.if %50 {
      %c0_16 = arith.constant 0 : index
      %c0_17 = arith.constant 0 : index
      %c0_18 = arith.constant 0 : index
      %c0_19 = arith.constant 0 : index
      %51 = vector.load %arg3[%c0_16, %c0_17, %c0_18, %c0_19] : memref<1x4x8x128xf32, #tpu.memory_space<vmem>>, vector<1x4x8x128xf32>
      %52 = arith.addf %51, %44 : vector<1x4x8x128xf32>
      %c0_20 = arith.constant 0 : index
      %c0_21 = arith.constant 0 : index
      %c0_22 = arith.constant 0 : index
      %c0_23 = arith.constant 0 : index
      %53 = vector.load %arg3[%c0_20, %c0_21, %c0_22, %c0_23] : memref<1x4x8x128xf32, #tpu.memory_space<vmem>>, vector<1x4x8x128xf32>
      tpu.vector_store %arg3[%c0_20, %c0_21, %c0_22, %c0_23], %52 {strides = array<i32>} : memref<1x4x8x128xf32, #tpu.memory_space<vmem>>, vector<1x4x8x128xf32>,
    } else {
    }
    return
  }
  func.func @transform_0(%arg0: i32, %arg1: i32) -> (i32, i32, i32) {
    %c1_i32 = arith.constant 1 : i32
    %0 = arith.muli %arg0, %c1_i32 : i32
    %1 = arith.addi %0, %arg1 : i32
    %c0_i32 = arith.constant 0 : i32
    %c0_i32_0 = arith.constant 0 : i32
    %c0_i32_1 = arith.constant 0 : i32
    return %c0_i32, %1, %c0_i32_0 : i32, i32, i32
  }
  func.func @transform_1(%arg0: i32, %arg1: i32) -> (i32, i32, i32, i32) {
    %c0_i32 = arith.constant 0 : i32
    %c0_i32_0 = arith.constant 0 : i32
    %c0_i32_1 = arith.constant 0 : i32
    %c0_i32_2 = arith.constant 0 : i32
    return %arg0, %c0_i32, %c0_i32_0, %c0_i32_1 : i32, i32, i32, i32
  }
}

</mosaic_0001>

<bundles_post_ra>
// kernel: tpu_custom_call.1
= control target key start
LH: loop header
LB: loop body
LE: loop exit
PB: predicated region body
PF: predicated region fallthrough
CT: control target
= control target key end

     0   :  { %6 = vsyncpa [#allocation3], 0  ;;  %s211_s0 = inlined_call_operand.hbm [shape: f32[3,8,128], index: 0, kind: input, shape index: {}]   ;;  %s212_s1 = inlined_call_operand.hbm [shape: f32[1,4,8,128], index: 1, kind: output, shape index: {}]  }
   0x1   :  { %7 = vsyncpa [#allocation4], 0  ;;  %s166_s6 = smov [#allocation2]   ;;  %s118_s10 = scalar_lea.hbm %s211_s0, 384 }
   0x2   :  { %s16_s7 = sshll.u32 %s166_s6, 4  ;;  %p119_p0 = scmp.ne.s32.totalorder %s211_s0, %s118_s10  ;;  %s17_s7 = int_to_ptr.vmem [resolvable:$true] %s16_s7 }
   0x3   :  { %p122_p1 = scmp.lt.u32.totalorder %s118_s10, %s211_s0 }
   0x5   :  { %p124_p2 = pnand %p122_p1, %p119_p0 }
   0x7   :  { %127 = shalt.err (!%p124_p2)
}
   0x8   :  { %s128_s15 = scalar_lea.vmem %s17_s7, 384  ;;  %p133_p4 = scmp.lt.s32.totalorder %s17_s7, %s17_s7 }
   0x9   :  { %p129_p3 = scmp.ne.s32.totalorder %s17_s7, %s128_s15  ;;  %p134_p5 = scmp.lt.s32.totalorder %s128_s15, %s128_s15 }
   0xb   :  { %p135_p6 = por %p134_p5, %p133_p4 }
   0xd   :  { %p136_p7 = pnand %p135_p6, %p129_p3 }
   0xf   :  { %139 = shalt.err (!%p136_p7)
}
  0x10   :  { %s167_s16 = smov 128   ;;  %s168_s17 = smov 8  }
  0x11   :  { %22 = dma.hbm_to_vmem [thread:$0]  %s211_s0, 384, %s17_s7, [#allocation3], %s167_s16, %s167_s16, %s168_s17  }
  0x12   :  { %162 = dma.done.wait [#allocation3], 384  }
  0x13   :  { %163 = vsyncadd [#allocation3], 4294966912  ;;  %v27_v0 = vld [vmem:[#allocation2] sm:$0xff]  ;;  %v29_v1 = vld [vmem:[#allocation2 + $0x8] sm:$0xff]  ;;  %v169_v9 = vmov 0.0   ;;  %s170_s0 = smov [#allocation5]  }
  0x14   :  { %v31_v2 = vld [vmem:[#allocation2 + $0x10] sm:$0xff]  ;;  %v32_v3 = vsub.f32 %v27_v0, %v29_v1  ;;  %s90_s20 = sshll.u32 %s170_s0, 4  ;;  %s91_s20 = int_to_ptr.vmem [resolvable:$true] %s90_s20 }
  0x15   :  { %v33_v4 = vsub.f32 %v27_v0, %v31_v2  ;;  %v41_v5 = vsub.f32 %v31_v2, %v29_v1  ;;  %vm50_vm0 = vcmp.gt.f32.partialorder %v27_v0, %v31_v2  ;;  %vm51_vm1 = vcmp.gt.f32.partialorder %v31_v2, %v29_v1  ;;  %s140_s21 = scalar_lea.vmem %s91_s20, 512  ;;  %p145_p9 = scmp.lt.s32.totalorder %s91_s20, %s91_s20 }
  0x16   :  { %65 = vst [vmem:[#allocation5] sm:$0xff] %v32_v3  ;;  %vm52_vm2 = vmand %vm50_vm0, %vm51_vm1  ;;  %v55_v8 = vand.u32 2147483647, %v32_v3  ;;  %p141_p8 = scmp.ne.s32.totalorder %s91_s20, %s140_s21  ;;  %p146_p10 = scmp.lt.s32.totalorder %s140_s21, %s140_s21 }
  0x17   :  { %v102_v6 = vmul.f32 -100.0, %v33_v4  ;;  %v103_v7 = vmul.f32 -100.0, %v41_v5  ;;  %v104_v10 = vsel %vm52_vm2, 1.0, %v169_v9 }
  0x18   :  { %67 = vst [vmem:[#allocation5 + $0x10] sm:$0xff] %v104_v10  ;;  %v56_v13 = vmul.f32 %v104_v10, %v55_v8  ;;  %p147_p11 = por %p146_p10, %p145_p9 }
  0x19   :  { %v36_v11 = vmul.f32 1.442695, %v102_v6  ;;  %v44_v12 = vmul.f32 1.442695, %v103_v7 }
  0x1a   :  { %68 = vst [vmem:[#allocation5 + $0x18] sm:$0xff] %v56_v13  ;;  %p148_p12 = pnand %p147_p11, %p141_p8 }
  0x1b   :  { %110 = vpow2.f32 %v36_v11 }
  0x1c   :  { %112 = vpow2.f32 %v44_v12 }
  0x25   :  { %v111_v14 = vpop.eup %110 }
  0x26   :  { %v113_v15 = vpop.eup %112  ;;  %v38_v16 = vadd.f32 1.0, %v111_v14 }
  0x27   :  { %v46_v17 = vadd.f32 1.0, %v113_v15 }
  0x28   :  { %114 = vrcp.f32 %v38_v16 }
  0x29   :  { %116 = vrcp.f32 %v46_v17 }
  0x32   :  { %v115_v18 = vpop.eup %114 }
  0x33   :  { %v117_v19 = vpop.eup %116 }
  0x34   :  { %v49_v20 = vmul.f32 %v117_v19, %v115_v18 }
  0x36   :  { %66 = vst [vmem:[#allocation5 + $0x8] sm:$0xff] %v49_v20 }
  0x37   :  { %151 = shalt.err (!%p148_p12)
}
  0x38   :  { %s152_s24 = scalar_lea.hbm %s212_s1, 512 }
  0x39   :  { %p153_p13 = scmp.ne.s32.totalorder %s212_s1, %s152_s24  ;;  %p156_p0 = scmp.lt.u32.totalorder %s152_s24, %s212_s1 }
  0x3b   :  { %p158_p1 = pnand %p156_p0, %p153_p13 }
  0x3d   :  { %161 = shalt.err (!%p158_p1)
}
  0x3e   :  { %96 = dma.vmem_to_hbm [thread:$0]  %s91_s20, 512, %s212_s1, [#allocation4], %s167_s16, %s167_s16, %s168_s17  }
  0x3f   :  { %164 = dma.done.wait [#allocation4], 512  }
  0x40   :  { %165 = vsyncadd [#allocation4], 4294966784 }
  0x41   :  { %100 = vsyncpa [#allocation3], 1 }
  0x42   :  { %101 = vsyncpa [#allocation4], 1 }

</bundles_post_ra>
